<compile_context>
chip_gen: v6e
topology: v6e:2x2x1
jax: 0.10.0
libtpu: 0.0.40
codegen_flags: <defaults>
</compile_context>

<pallas_src>
import functools
import math

import jax
import jax.numpy as jnp
from jax.experimental import pallas as pl
from jax.experimental.pallas import tpu as pltpu


def _label_smoothing_kernel(target_ref, output_ref, loss_ref, acc_ref, *,
                            smoothing_value, confidence, entropy_const,
                            padding_idx, tv):
    j = pl.program_id(1)  # vocab-tile index (reduction axis, last in grid)

    @pl.when(j == 0)
    def _init():
        acc_ref[...] = jnp.zeros_like(acc_ref)

    tgt = target_ref[...]                                   # (tb, 1) int32
    tb = acc_ref.shape[0]

    # Reusable (tb, 128) lane iota; the vocab-tile offset rides on the
    # scalar-shifted target so per-group work is a compare against a constant
    # shift of it.
    lane = jax.lax.broadcasted_iota(jnp.int32, (tb, 128), 1)
    tgt_local = tgt - j * tv                                # (tb, 1) int32

    # Padding column lives in a statically known lane group; whether this grid
    # step's vocab tile contains it is a cheap runtime scalar predicate.
    pad_tile = padding_idx // tv
    pad_group = (padding_idx % tv) // 128
    pad_lane = padding_idx % 128
    in_pad_tile = (j == pad_tile)

    cval = jnp.float32(confidence)
    sval = jnp.float32(smoothing_value)

    partial = jnp.zeros((tb, 128), jnp.float32)
    for g in range(tv // 128):
        xg = output_ref[:, g * 128:(g + 1) * 128].astype(jnp.float32)
        # Fused weight: confidence at the target column, smoothing elsewhere,
        # zero at the padding column.
        w = jnp.where(lane == (tgt_local - g * 128), cval, sval)
        if g == pad_group:
            w = jnp.where(jnp.logical_and(in_pad_tile, lane == pad_lane),
                          jnp.float32(0.0), w)
        partial = partial + xg * w
    acc_ref[...] += partial

    @pl.when(j == pl.num_programs(1) - 1)
    def _finalize():
        row = acc_ref[...].sum(axis=-1, keepdims=True)   # single XLU reduce
        row = row - entropy_const                        # + sum_v -t*log(t)
        row = jnp.where(tgt == padding_idx, 0.0, row)    # masked_fill_ pad rows
        loss_ref[...] = row.astype(loss_ref.dtype)


def _pick_tb(B_pad, align):
    """Largest batch tile <=128 dividing B_pad, preferring >=2 batch blocks."""
    best = None
    for tb in range(min(B_pad, 128), align - 1, -align):
        if B_pad % tb == 0:
            if B_pad // tb >= 2:
                return tb
            if best is None:
                best = tb
    return best if best is not None else B_pad


def _pick_tv(V, tb, itemsize, max_tile_bytes=4 * 1024 * 1024):
    """Largest vocab tile (multiple of 128, dividing V) with tb*tv*item <= ~4MiB."""
    assert V % 128 == 0
    nlanes = V // 128
    for k in range(nlanes, 0, -1):
        if nlanes % k != 0:
            continue
        tv = k * 128
        if tb * tv * itemsize <= max_tile_bytes:
            return tv
    return 128


def label_smoothing_loss(output, target, *, label_smoothing, padding_idx=0,
                         tb=None, tv=None):
    """output: (B, V) float32/bf16 log-probs; target: (B,) int -> loss: (B,) f32."""
    B, V = output.shape
    assert 0.0 < label_smoothing <= 1.0
    assert V % 128 == 0, "vocab size must be a multiple of 128"
    assert 0 <= padding_idx < V

    smoothing_value = label_smoothing / (V - 2)
    confidence = 1.0 - label_smoothing

    # Per-row entropy sum_v t*log(t) is a compile-time constant (padding rows
    # are handled by the final row mask).
    entropy_const = 0.0
    if confidence > 0.0:
        entropy_const += confidence * math.log(confidence)
    if smoothing_value > 0.0 and V > 2:
        entropy_const += (V - 2) * smoothing_value * math.log(smoothing_value)

    itemsize = jnp.dtype(output.dtype).itemsize
    align = 8 if itemsize >= 4 else 16   # (8,128) f32 / (16,128) bf16 min tile

    # Pad the batch to the sublane alignment instead of using an unaligned
    # full-batch tile; padded rows carry target=padding_idx -> zero loss.
    B_pad = ((B + align - 1) // align) * align
    target_i32 = target.astype(jnp.int32)
    if B_pad != B:
        output = jnp.pad(output, ((0, B_pad - B), (0, 0)))
        target_i32 = jnp.pad(target_i32, (0, B_pad - B),
                             constant_values=padding_idx)

    if tb is None:
        tb = _pick_tb(B_pad, align)
    if tv is None:
        tv = _pick_tv(V, tb, itemsize)
    assert B_pad % tb == 0 and tb % align == 0
    assert V % tv == 0 and tv % 128 == 0

    target2d = target_i32.reshape(B_pad, 1)

    kernel = functools.partial(
        _label_smoothing_kernel,
        smoothing_value=float(smoothing_value),
        confidence=float(confidence),
        entropy_const=float(entropy_const),
        padding_idx=int(padding_idx),
        tv=tv,
    )

    cost = pl.CostEstimate(
        flops=4 * B_pad * V,
        transcendentals=0,
        bytes_accessed=B_pad * V * itemsize + 2 * B_pad * 4,
    )

    def build(buffer_count):
        if buffer_count > 2:
            x_spec = pl.BlockSpec((tb, tv), lambda i, j: (i, j),
                                  pipeline_mode=pl.Buffered(buffer_count))
        else:
            x_spec = pl.BlockSpec((tb, tv), lambda i, j: (i, j))
        return pl.pallas_call(
            kernel,
            out_shape=jax.ShapeDtypeStruct((B_pad, 1), jnp.float32),
            grid_spec=pltpu.PrefetchScalarGridSpec(
                num_scalar_prefetch=0,
                grid=(B_pad // tb, V // tv),
                in_specs=[
                    pl.BlockSpec((tb, 1), lambda i, j: (i, 0)),   # target ids
                    x_spec,                                        # log-probs
                ],
                out_specs=pl.BlockSpec((tb, 1), lambda i, j: (i, 0)),
                scratch_shapes=[pltpu.VMEM((tb, 128), jnp.float32)],
            ),
            compiler_params=pltpu.CompilerParams(
                dimension_semantics=("parallel", "arbitrary"),
                vmem_limit_bytes=32 * 1024 * 1024,
            ),
            cost_estimate=cost,
        )

    # Triple-buffer the streamed input when the reduction is long enough and
    # VMEM allows (hides DMA on fast-HBM parts); fall back to default
    # double-buffering if the build rejects it.
    want_3buf = (V // tv) >= 3 and (3 * tb * tv * itemsize) <= 16 * 1024 * 1024
    try:
        loss2d = build(3 if want_3buf else 2)(target2d, output)
        loss2d = jax.block_until_ready(loss2d)
    except Exception:
        loss2d = build(2)(target2d, output)

    return loss2d.reshape(B_pad)[:B]


def _reference(output, target, *, label_smoothing, padding_idx=0):
    B, V = output.shape
    smoothing_value = label_smoothing / (V - 2)
    confidence = 1.0 - label_smoothing
    one_hot = jnp.full((V,), smoothing_value, dtype=jnp.float32)
    one_hot = one_hot.at[padding_idx].set(0.0)
    true_dist = jnp.tile(one_hot[None, :], (B, 1))
    true_dist = true_dist.at[jnp.arange(B), target].set(confidence)
    true_dist = jnp.where((target == padding_idx)[:, None], 0.0, true_dist)
    safe_log = jnp.log(jnp.where(true_dist > 0, true_dist, 1.0))
    kl = jnp.where(true_dist > 0, true_dist * (safe_log - output.astype(jnp.float32)), 0.0)
    return -kl.sum(-1)


if __name__ == "__main__":
    B, V = 8, 256
    label_smoothing = 0.1
    padding_idx = 0

    key = jax.random.PRNGKey(0)
    k_logits, k_tgt = jax.random.split(key)
    logits = jax.random.normal(k_logits, (B, V), dtype=jnp.float32)
    output = jax.nn.log_softmax(logits, axis=-1)          # kl_div expects log-probs
    target = jax.random.randint(k_tgt, (B,), 0, V, dtype=jnp.int32)
    target = target.at[1].set(padding_idx)                # include a padding row

    loss = label_smoothing_loss(output, target,
                                label_smoothing=label_smoothing,
                                padding_idx=padding_idx)
    loss = jax.block_until_ready(loss)

    ref = _reference(output, target, label_smoothing=label_smoothing,
                     padding_idx=padding_idx)
    assert loss.shape == (B,)
    assert jnp.allclose(loss, ref, rtol=1e-5, atol=1e-5), (loss, ref)

    print("KERNEL_OK")
</pallas_src>

<mosaic_0001>
module attributes {stable_mosaic.version = 11 : i64} {
  func.func @_label_smoothing_kernel(%arg0: i32, %arg1: i32, %arg2: memref<8x1xi32, #tpu.memory_space<vmem>>, %arg3: memref<8x256xf32, #tpu.memory_space<vmem>>, %arg4: memref<8x1xf32, #tpu.memory_space<vmem>>, %arg5: memref<8x128xf32, #tpu.memory_space<vmem>>) attributes {dimension_semantics = [#tpu.dimension_semantics<parallel>, #tpu.dimension_semantics<arbitrary>], iteration_bounds = array<i64: 1, 1>, scalar_prefetch = 0 : i64, scratch_operands = 1 : i64, tpu.core_type = #tpu.core_type<tc>, window_params = [{transform_indices = @transform_0, window_bounds = array<i64: 8, 1>}, {transform_indices = @transform_1, window_bounds = array<i64: 8, 256>}, {transform_indices = @transform_2, window_bounds = array<i64: 8, 1>}]} {
    %c0_i32 = arith.constant 0 : i32
    %0 = arith.cmpi eq, %arg1, %c0_i32 : i32
    %1 = arith.extui %0 : i1 to i32
    %c0_i32_0 = arith.constant 0 : i32
    %2 = arith.cmpi ne, %1, %c0_i32_0 : i32
    scf.if %2 {
      %cst_19 = arith.constant 0.000000e+00 : f32
      %42 = vector.broadcast %cst_19 : f32 to vector<8x128xf32>
      %c0_20 = arith.constant 0 : index
      %c0_21 = arith.constant 0 : index
      %43 = vector.load %arg5[%c0_20, %c0_21] : memref<8x128xf32, #tpu.memory_space<vmem>>, vector<8x128xf32>
      tpu.vector_store %arg5[%c0_20, %c0_21], %42 {strides = array<i32>} : memref<8x128xf32, #tpu.memory_space<vmem>>, vector<8x128xf32>,
    } else {
    }
    %c0 = arith.constant 0 : index
    %c0_1 = arith.constant 0 : index
    %3 = vector.load %arg2[%c0, %c0_1] : memref<8x1xi32, #tpu.memory_space<vmem>>, vector<8x1xi32>
    %4 = tpu.iota {dimensions = array<i32: 1>} : vector<8x128xi32>
    %c256_i32 = arith.constant 256 : i32
    %5 = arith.muli %arg1, %c256_i32 : i32
    %6 = vector.broadcast %5 : i32 to vector<8x1xi32>
    %7 = arith.subi %3, %6 : vector<8x1xi32>
    %c0_i32_2 = arith.constant 0 : i32
    %8 = arith.cmpi eq, %arg1, %c0_i32_2 : i32
    %cst = arith.constant 0.000000e+00 : f32
    %9 = vector.broadcast %cst : f32 to vector<8x128xf32>
    %c0_3 = arith.constant 0 : index
    %c0_4 = arith.constant 0 : index
    %10 = vector.load %arg3[%c0_3, %c0_4] : memref<8x256xf32, #tpu.memory_space<vmem>>, vector<8x128xf32>
    %c0_i32_5 = arith.constant 0 : i32
    %11 = vector.broadcast %c0_i32_5 : i32 to vector<8x1xi32>
    %12 = arith.subi %7, %11 : vector<8x1xi32>
    %13 = vector.broadcast %12 : vector<8x1xi32> to vector<8x128xi32>
    %14 = arith.cmpi eq, %4, %13 : vector<8x128xi32>
    %cst_6 = arith.constant 0.899999976 : f32
    %cst_7 = arith.constant 3.93700786E-4 : f32
    %15 = vector.broadcast %cst_6 : f32 to vector<8x128xf32>
    %16 = vector.broadcast %cst_7 : f32 to vector<8x128xf32>
    %17 = arith.select %14, %15, %16 : vector<8x128xi1>, vector<8x128xf32>
    %c0_i32_8 = arith.constant 0 : i32
    %18 = vector.broadcast %c0_i32_8 : i32 to vector<8x128xi32>
    %19 = arith.cmpi eq, %4, %18 : vector<8x128xi32>
    %20 = vector.broadcast %8 : i1 to vector<8x128xi1>
    %21 = arith.andi %20, %19 : vector<8x128xi1>
    %cst_9 = arith.constant 0.000000e+00 : f32
    %22 = vector.broadcast %cst_9 : f32 to vector<8x128xf32>
    %23 = arith.select %21, %22, %17 : vector<8x128xi1>, vector<8x128xf32>
    %24 = arith.mulf %10, %23 : vector<8x128xf32>
    %25 = arith.addf %9, %24 : vector<8x128xf32>
    %c0_10 = arith.constant 0 : index
    %c128 = arith.constant 128 : index
    %26 = vector.load %arg3[%c0_10, %c128] : memref<8x256xf32, #tpu.memory_space<vmem>>, vector<8x128xf32>
    %c128_i32 = arith.constant 128 : i32
    %27 = vector.broadcast %c128_i32 : i32 to vector<8x1xi32>
    %28 = arith.subi %7, %27 : vector<8x1xi32>
    %29 = vector.broadcast %28 : vector<8x1xi32> to vector<8x128xi32>
    %30 = arith.cmpi eq, %4, %29 : vector<8x128xi32>
    %cst_11 = arith.constant 0.899999976 : f32
    %cst_12 = arith.constant 3.93700786E-4 : f32
    %31 = vector.broadcast %cst_11 : f32 to vector<8x128xf32>
    %32 = vector.broadcast %cst_12 : f32 to vector<8x128xf32>
    %33 = arith.select %30, %31, %32 : vector<8x128xi1>, vector<8x128xf32>
    %34 = arith.mulf %26, %33 : vector<8x128xf32>
    %35 = arith.addf %25, %34 : vector<8x128xf32>
    %c0_13 = arith.constant 0 : index
    %c0_14 = arith.constant 0 : index
    %36 = vector.load %arg5[%c0_13, %c0_14] : memref<8x128xf32, #tpu.memory_space<vmem>>, vector<8x128xf32>
    %37 = arith.addf %36, %35 : vector<8x128xf32>
    %c0_15 = arith.constant 0 : index
    %c0_16 = arith.constant 0 : index
    %38 = vector.load %arg5[%c0_15, %c0_16] : memref<8x128xf32, #tpu.memory_space<vmem>>, vector<8x128xf32>
    tpu.vector_store %arg5[%c0_15, %c0_16], %37 {strides = array<i32>} : memref<8x128xf32, #tpu.memory_space<vmem>>, vector<8x128xf32>,
    %c0_i32_17 = arith.constant 0 : i32
    %39 = arith.cmpi eq, %arg1, %c0_i32_17 : i32
    %40 = arith.extui %39 : i1 to i32
    %c0_i32_18 = arith.constant 0 : i32
    %41 = arith.cmpi ne, %40, %c0_i32_18 : i32
    scf.if %41 {
      %c0_19 = arith.constant 0 : index
      %c0_20 = arith.constant 0 : index
      %42 = vector.load %arg5[%c0_19, %c0_20] : memref<8x128xf32, #tpu.memory_space<vmem>>, vector<8x128xf32>
      %cst_21 = arith.constant dense<0.000000e+00> : vector<8xf32>
      %43 = vector.multi_reduction <add>, %42, %cst_21 [1] : vector<8x128xf32> to vector<8xf32>
      %44 = vector.shape_cast %43 : vector<8xf32> to vector<8x1xf32>
      %cst_22 = arith.constant -0.878816425 : f32
      %45 = vector.broadcast %cst_22 : f32 to vector<8x1xf32>
      %46 = arith.subf %44, %45 : vector<8x1xf32>
      %c0_i32_23 = arith.constant 0 : i32
      %47 = vector.broadcast %c0_i32_23 : i32 to vector<8x1xi32>
      %48 = arith.cmpi eq, %3, %47 : vector<8x1xi32>
      %cst_24 = arith.constant 0.000000e+00 : f32
      %49 = vector.broadcast %cst_24 : f32 to vector<8x1xf32>
      %50 = arith.select %48, %49, %46 : vector<8x1xi1>, vector<8x1xf32>
      %c0_25 = arith.constant 0 : index
      %c0_26 = arith.constant 0 : index
      %51 = vector.load %arg4[%c0_25, %c0_26] : memref<8x1xf32, #tpu.memory_space<vmem>>, vector<8x1xf32>
      tpu.vector_store %arg4[%c0_25, %c0_26], %50 {strides = array<i32>} : memref<8x1xf32, #tpu.memory_space<vmem>>, vector<8x1xf32>,
    } else {
    }
    return
  }
  func.func @transform_0(%arg0: i32, %arg1: i32) -> (i32, i32) {
    %c0_i32 = arith.constant 0 : i32
    %c0_i32_0 = arith.constant 0 : i32
    return %arg0, %c0_i32 : i32, i32
  }
  func.func @transform_1(%arg0: i32, %arg1: i32) -> (i32, i32) {
    %c0_i32 = arith.constant 0 : i32
    return %arg0, %arg1 : i32, i32
  }
  func.func @transform_2(%arg0: i32, %arg1: i32) -> (i32, i32) {
    %c0_i32 = arith.constant 0 : i32
    %c0_i32_0 = arith.constant 0 : i32
    return %arg0, %c0_i32 : i32, i32
  }
}

module attributes {stable_mosaic.version = 11 : i64} {
  func.func @_label_smoothing_kernel(%arg0: i32, %arg1: i32, %arg2: memref<8x1xi32, #tpu.memory_space<vmem>>, %arg3: memref<8x256xf32, #tpu.memory_space<vmem>>, %arg4: memref<8x1xf32, #tpu.memory_space<vmem>>, %arg5: memref<8x128xf32, #tpu.memory_space<vmem>>) attributes {dimension_semantics = [#tpu.dimension_semantics<parallel>, #tpu.dimension_semantics<arbitrary>], iteration_bounds = array<i64: 1, 1>, scalar_prefetch = 0 : i64, scratch_operands = 1 : i64, tpu.core_type = #tpu.core_type<tc>, window_params = [{transform_indices = @transform_0, window_bounds = array<i64: 8, 1>}, {transform_indices = @transform_1, window_bounds = array<i64: 8, 256>}, {transform_indices = @transform_2, window_bounds = array<i64: 8, 1>}]} {
    %c0_i32 = arith.constant 0 : i32
    %0 = arith.cmpi eq, %arg1, %c0_i32 : i32
    %1 = arith.extui %0 : i1 to i32
    %c0_i32_0 = arith.constant 0 : i32
    %2 = arith.cmpi ne, %1, %c0_i32_0 : i32
    scf.if %2 {
      %cst_19 = arith.constant 0.000000e+00 : f32
      %42 = vector.broadcast %cst_19 : f32 to vector<8x128xf32>
      %c0_20 = arith.constant 0 : index
      %c0_21 = arith.constant 0 : index
      %43 = vector.load %arg5[%c0_20, %c0_21] : memref<8x128xf32, #tpu.memory_space<vmem>>, vector<8x128xf32>
      tpu.vector_store %arg5[%c0_20, %c0_21], %42 {strides = array<i32>} : memref<8x128xf32, #tpu.memory_space<vmem>>, vector<8x128xf32>,
    } else {
    }
    %c0 = arith.constant 0 : index
    %c0_1 = arith.constant 0 : index
    %3 = vector.load %arg2[%c0, %c0_1] : memref<8x1xi32, #tpu.memory_space<vmem>>, vector<8x1xi32>
    %4 = tpu.iota {dimensions = array<i32: 1>} : vector<8x128xi32>
    %c256_i32 = arith.constant 256 : i32
    %5 = arith.muli %arg1, %c256_i32 : i32
    %6 = vector.broadcast %5 : i32 to vector<8x1xi32>
    %7 = arith.subi %3, %6 : vector<8x1xi32>
    %c0_i32_2 = arith.constant 0 : i32
    %8 = arith.cmpi eq, %arg1, %c0_i32_2 : i32
    %cst = arith.constant 0.000000e+00 : f32
    %9 = vector.broadcast %cst : f32 to vector<8x128xf32>
    %c0_3 = arith.constant 0 : index
    %c0_4 = arith.constant 0 : index
    %10 = vector.load %arg3[%c0_3, %c0_4] : memref<8x256xf32, #tpu.memory_space<vmem>>, vector<8x128xf32>
    %c0_i32_5 = arith.constant 0 : i32
    %11 = vector.broadcast %c0_i32_5 : i32 to vector<8x1xi32>
    %12 = arith.subi %7, %11 : vector<8x1xi32>
    %13 = vector.broadcast %12 : vector<8x1xi32> to vector<8x128xi32>
    %14 = arith.cmpi eq, %4, %13 : vector<8x128xi32>
    %cst_6 = arith.constant 0.899999976 : f32
    %cst_7 = arith.constant 3.93700786E-4 : f32
    %15 = vector.broadcast %cst_6 : f32 to vector<8x128xf32>
    %16 = vector.broadcast %cst_7 : f32 to vector<8x128xf32>
    %17 = arith.select %14, %15, %16 : vector<8x128xi1>, vector<8x128xf32>
    %c0_i32_8 = arith.constant 0 : i32
    %18 = vector.broadcast %c0_i32_8 : i32 to vector<8x128xi32>
    %19 = arith.cmpi eq, %4, %18 : vector<8x128xi32>
    %20 = vector.broadcast %8 : i1 to vector<8x128xi1>
    %21 = arith.andi %20, %19 : vector<8x128xi1>
    %cst_9 = arith.constant 0.000000e+00 : f32
    %22 = vector.broadcast %cst_9 : f32 to vector<8x128xf32>
    %23 = arith.select %21, %22, %17 : vector<8x128xi1>, vector<8x128xf32>
    %24 = arith.mulf %10, %23 : vector<8x128xf32>
    %25 = arith.addf %9, %24 : vector<8x128xf32>
    %c0_10 = arith.constant 0 : index
    %c128 = arith.constant 128 : index
    %26 = vector.load %arg3[%c0_10, %c128] : memref<8x256xf32, #tpu.memory_space<vmem>>, vector<8x128xf32>
    %c128_i32 = arith.constant 128 : i32
    %27 = vector.broadcast %c128_i32 : i32 to vector<8x1xi32>
    %28 = arith.subi %7, %27 : vector<8x1xi32>
    %29 = vector.broadcast %28 : vector<8x1xi32> to vector<8x128xi32>
    %30 = arith.cmpi eq, %4, %29 : vector<8x128xi32>
    %cst_11 = arith.constant 0.899999976 : f32
    %cst_12 = arith.constant 3.93700786E-4 : f32
    %31 = vector.broadcast %cst_11 : f32 to vector<8x128xf32>
    %32 = vector.broadcast %cst_12 : f32 to vector<8x128xf32>
    %33 = arith.select %30, %31, %32 : vector<8x128xi1>, vector<8x128xf32>
    %34 = arith.mulf %26, %33 : vector<8x128xf32>
    %35 = arith.addf %25, %34 : vector<8x128xf32>
    %c0_13 = arith.constant 0 : index
    %c0_14 = arith.constant 0 : index
    %36 = vector.load %arg5[%c0_13, %c0_14] : memref<8x128xf32, #tpu.memory_space<vmem>>, vector<8x128xf32>
    %37 = arith.addf %36, %35 : vector<8x128xf32>
    %c0_15 = arith.constant 0 : index
    %c0_16 = arith.constant 0 : index
    %38 = vector.load %arg5[%c0_15, %c0_16] : memref<8x128xf32, #tpu.memory_space<vmem>>, vector<8x128xf32>
    tpu.vector_store %arg5[%c0_15, %c0_16], %37 {strides = array<i32>} : memref<8x128xf32, #tpu.memory_space<vmem>>, vector<8x128xf32>,
    %c0_i32_17 = arith.constant 0 : i32
    %39 = arith.cmpi eq, %arg1, %c0_i32_17 : i32
    %40 = arith.extui %39 : i1 to i32
    %c0_i32_18 = arith.constant 0 : i32
    %41 = arith.cmpi ne, %40, %c0_i32_18 : i32
    scf.if %41 {
      %c0_19 = arith.constant 0 : index
      %c0_20 = arith.constant 0 : index
      %42 = vector.load %arg5[%c0_19, %c0_20] : memref<8x128xf32, #tpu.memory_space<vmem>>, vector<8x128xf32>
      %cst_21 = arith.constant dense<0.000000e+00> : vector<8xf32>
      %43 = vector.multi_reduction <add>, %42, %cst_21 [1] : vector<8x128xf32> to vector<8xf32>
      %44 = vector.shape_cast %43 : vector<8xf32> to vector<8x1xf32>
      %cst_22 = arith.constant -0.878816425 : f32
      %45 = vector.broadcast %cst_22 : f32 to vector<8x1xf32>
      %46 = arith.subf %44, %45 : vector<8x1xf32>
      %c0_i32_23 = arith.constant 0 : i32
      %47 = vector.broadcast %c0_i32_23 : i32 to vector<8x1xi32>
      %48 = arith.cmpi eq, %3, %47 : vector<8x1xi32>
      %cst_24 = arith.constant 0.000000e+00 : f32
      %49 = vector.broadcast %cst_24 : f32 to vector<8x1xf32>
      %50 = arith.select %48, %49, %46 : vector<8x1xi1>, vector<8x1xf32>
      %c0_25 = arith.constant 0 : index
      %c0_26 = arith.constant 0 : index
      %51 = vector.load %arg4[%c0_25, %c0_26] : memref<8x1xf32, #tpu.memory_space<vmem>>, vector<8x1xf32>
      tpu.vector_store %arg4[%c0_25, %c0_26], %50 {strides = array<i32>} : memref<8x1xf32, #tpu.memory_space<vmem>>, vector<8x1xf32>,
    } else {
    }
    return
  }
  func.func @transform_0(%arg0: i32, %arg1: i32) -> (i32, i32) {
    %c0_i32 = arith.constant 0 : i32
    %c0_i32_0 = arith.constant 0 : i32
    return %arg0, %c0_i32 : i32, i32
  }
  func.func @transform_1(%arg0: i32, %arg1: i32) -> (i32, i32) {
    %c0_i32 = arith.constant 0 : i32
    return %arg0, %arg1 : i32, i32
  }
  func.func @transform_2(%arg0: i32, %arg1: i32) -> (i32, i32) {
    %c0_i32 = arith.constant 0 : i32
    %c0_i32_0 = arith.constant 0 : i32
    return %arg0, %c0_i32 : i32, i32
  }
}

</mosaic_0001>

<bundles_post_ra>
// kernel: tpu_custom_call.1
= control target key start
LH: loop header
LB: loop body
LE: loop exit
PB: predicated region body
PF: predicated region fallthrough
CT: control target
= control target key end

     0   :  { %7 = vsyncpa [#allocation4], 0  ;;  %s104_s9 = smov [#allocation3]   ;;  %s131_s0 = inlined_call_operand.vmem [shape: s32[8,1], index: 0, kind: input, shape index: {}]   ;;  %s132_s1 = inlined_call_operand.hbm [shape: f32[8,256], index: 1, kind: input, shape index: {}]   ;;  %s133_s2 = inlined_call_operand.vmem [shape: f32[8,1], index: 2, kind: output, shape index: {}]  }
   0x1   :  { %s16_s10 = sshll.u32 %s104_s9, 4  ;;  %s17_s10 = int_to_ptr.vmem [resolvable:$true] %s16_s10 }
   0x2   :  { %s90_s11 = scalar_lea.vmem %s17_s10, 256  ;;  %p95_p1 = scmp.lt.s32.totalorder %s17_s10, %s17_s10 }
   0x3   :  { %p91_p0 = scmp.ne.s32.totalorder %s17_s10, %s90_s11  ;;  %p96_p2 = scmp.lt.s32.totalorder %s90_s11, %s90_s11 }
   0x5   :  { %p97_p3 = por %p96_p2, %p95_p1 }
   0x7   :  { %p98_p4 = pnand %p97_p3, %p91_p0 }
   0x9   :  { %101 = shalt.err (!%p98_p4)
}
   0xa   :  { %19 = dma.hbm_to_vmem [thread:$0]  %s132_s1, 256, %s17_s10, [#allocation4]  }
   0xb   :  { %102 = dma.done.wait [#allocation4], 256  }
   0xc   :  { %103 = vsyncadd [#allocation4], 4294967040  ;;  %v105_v0 = vmov 0   ;;  %v28_v1 = vld [vmem:[%s131_s0] sm:$0xff]  ;;  %v29_v3 = vlaneseq  ;;  %v106_v6 = vmov 0.0003937008  }
   0xd   :  { %81 = vset.pattern.permute.xlu0 %v105_v0  ;;  %v76_v2 = vadd.s32 4294967168, %v28_v1  ;;  %v34_v10 = vld [vmem:[#allocation3] sm:$0xff]  ;;  %v48_v11 = vld [vmem:[#allocation3 + $0x8] sm:$0xff]  ;;  %vm67_vm3 = vcmp.eq.s32.totalorder %v28_v1, 0  ;;  %vm69_vm4 = vcmask 7168  }
   0xe   :  { %36 = vperm.xlu0 %81, %v28_v1   ;;  %v30_v4 = vand.u32 127, %v29_v3 }
  0x10   :  { %vm40_vm0 = vcmp.eq.s32.totalorder %v30_v4, 0 }
  0x12   :  { %51 = vperm.xlu0 %81, %v76_v2  }
  0x89   :  { %v37_v5 = vpop.permute.xlu0 %36 }
  0x8a   :  { %vm38_vm1 = vcmp.eq.s32.totalorder %v30_v4, %v37_v5 }
  0x8b   :  { %v39_v7 = vsel %vm38_vm1, 0.9, %v106_v6 }
  0x8c   :  { %v45_v8 = vsel %vm40_vm0, 0.0, %v39_v7 }
  0x8d   :  { %v52_v9 = vpop.permute.xlu0 %51  ;;  %v46_v13 = vmul.f32 %v45_v8, %v34_v10 }
  0x8e   :  { %vm53_vm2 = vcmp.eq.s32.totalorder %v30_v4, %v52_v9 }
  0x8f   :  { %v54_v12 = vsel %vm53_vm2, 0.9, %v106_v6 }
  0x90   :  { %v55_v14 = vmul.f32 %v54_v12, %v48_v11 }
  0x92   :  { %v56_v15 = vadd.f32 %v55_v14, %v46_v13 }
  0x94   :  { %64 = vadd.xlane.f32.xlu1 %v56_v15 }
 0x11d   :  { %v65_v16 = vpop.xlane.xlu1 %64 }
 0x11e   :  { %v77_v17 = vadd.f32 0.8788164, %v65_v16 }
 0x120   :  { %v68_v18 = vsel %vm67_vm3, 0.0, %v77_v17 }
 0x121   :  { %70 = vst.msk [vmem:[%s133_s2] sm:$0xff] %vm69_vm4, %v68_v18 }
 0x122   :  { %75 = vsyncpa [#allocation4], 1 }

// kernel: tpu_custom_call.1
= control target key start
LH: loop header
LB: loop body
LE: loop exit
PB: predicated region body
PF: predicated region fallthrough
CT: control target
= control target key end

     0   :  { %7 = vsyncpa [#allocation4], 0  ;;  %s104_s9 = smov [#allocation3]   ;;  %s131_s0 = inlined_call_operand.vmem [shape: s32[8,1], index: 0, kind: input, shape index: {}]   ;;  %s132_s1 = inlined_call_operand.hbm [shape: f32[8,256], index: 1, kind: input, shape index: {}]   ;;  %s133_s2 = inlined_call_operand.vmem [shape: f32[8,1], index: 2, kind: output, shape index: {}]  }
   0x1   :  { %s16_s10 = sshll.u32 %s104_s9, 4  ;;  %s17_s10 = int_to_ptr.vmem [resolvable:$true] %s16_s10 }
   0x2   :  { %s90_s11 = scalar_lea.vmem %s17_s10, 256  ;;  %p95_p1 = scmp.lt.s32.totalorder %s17_s10, %s17_s10 }
   0x3   :  { %p91_p0 = scmp.ne.s32.totalorder %s17_s10, %s90_s11  ;;  %p96_p2 = scmp.lt.s32.totalorder %s90_s11, %s90_s11 }
   0x5   :  { %p97_p3 = por %p96_p2, %p95_p1 }
   0x7   :  { %p98_p4 = pnand %p97_p3, %p91_p0 }
   0x9   :  { %101 = shalt.err (!%p98_p4)
}
   0xa   :  { %19 = dma.hbm_to_vmem [thread:$0]  %s132_s1, 256, %s17_s10, [#allocation4]  }
   0xb   :  { %102 = dma.done.wait [#allocation4], 256  }
   0xc   :  { %103 = vsyncadd [#allocation4], 4294967040  ;;  %v105_v0 = vmov 0   ;;  %v28_v1 = vld [vmem:[%s131_s0] sm:$0xff]  ;;  %v29_v3 = vlaneseq  ;;  %v106_v6 = vmov 0.0003937008  }
   0xd   :  { %81 = vset.pattern.permute.xlu0 %v105_v0  ;;  %v76_v2 = vadd.s32 4294967168, %v28_v1  ;;  %v34_v10 = vld [vmem:[#allocation3] sm:$0xff]  ;;  %v48_v11 = vld [vmem:[#allocation3 + $0x8] sm:$0xff]  ;;  %vm67_vm3 = vcmp.eq.s32.totalorder %v28_v1, 0  ;;  %vm69_vm4 = vcmask 7168  }
   0xe   :  { %36 = vperm.xlu0 %81, %v28_v1   ;;  %v30_v4 = vand.u32 127, %v29_v3 }
  0x10   :  { %vm40_vm0 = vcmp.eq.s32.totalorder %v30_v4, 0 }
  0x12   :  { %51 = vperm.xlu0 %81, %v76_v2  }
  0x89   :  { %v37_v5 = vpop.permute.xlu0 %36 }
  0x8a   :  { %vm38_vm1 = vcmp.eq.s32.totalorder %v30_v4, %v37_v5 }
  0x8b   :  { %v39_v7 = vsel %vm38_vm1, 0.9, %v106_v6 }
  0x8c   :  { %v45_v8 = vsel %vm40_vm0, 0.0, %v39_v7 }
  0x8d   :  { %v52_v9 = vpop.permute.xlu0 %51  ;;  %v46_v13 = vmul.f32 %v45_v8, %v34_v10 }
  0x8e   :  { %vm53_vm2 = vcmp.eq.s32.totalorder %v30_v4, %v52_v9 }
  0x8f   :  { %v54_v12 = vsel %vm53_vm2, 0.9, %v106_v6 }
  0x90   :  { %v55_v14 = vmul.f32 %v54_v12, %v48_v11 }
  0x92   :  { %v56_v15 = vadd.f32 %v55_v14, %v46_v13 }
  0x94   :  { %64 = vadd.xlane.f32.xlu1 %v56_v15 }
 0x11d   :  { %v65_v16 = vpop.xlane.xlu1 %64 }
 0x11e   :  { %v77_v17 = vadd.f32 0.8788164, %v65_v16 }
 0x120   :  { %v68_v18 = vsel %vm67_vm3, 0.0, %v77_v17 }
 0x121   :  { %70 = vst.msk [vmem:[%s133_s2] sm:$0xff] %vm69_vm4, %v68_v18 }
 0x122   :  { %75 = vsyncpa [#allocation4], 1 }

</bundles_post_ra>
